<compile_context>
chip_gen: v6e
topology: v6e:2x2x1
jax: 0.10.0
libtpu: 0.0.40
codegen_flags: <defaults>
</compile_context>

<pallas_src>
import functools

import jax
import jax.numpy as jnp
from jax.experimental import pallas as pl
from jax.experimental.pallas import tpu as pltpu


_TM_TARGET = 512        # target M tile (balanced against the real batch extent)
_TN_TARGET = 512        # target N tile (multiple of 256 -> full 256x256 MXU passes)
_TK_TARGET = 1024       # target K tile when K has to be tiled
_TK_SINGLE_MAX = 2048   # above this, always tile K (bounds VMEM, keeps pipelining)


def _round_up(a, m):
    return ((a + m - 1) // m) * m


def _divisor_tile(total, target, align):
    """Largest divisor of `total` that is a multiple of `align` and <= target."""
    q = total // align
    max_d = max(target // align, 1)
    best = 1
    for d in range(1, max_d + 1):
        if q % d == 0:
            best = d
    return best * align


@functools.lru_cache(maxsize=1)
def _vmem_limit_bytes():
    # Generation-dependent VMEM budget: ~3/4 of physical capacity
    # (=> ~48 MiB on v7x's 64 MiB, ~96 MiB on v5e/v6e's 128 MiB).
    try:
        cap = int(pltpu.get_tpu_info().vmem_capacity_bytes)
    except Exception:
        cap = 64 * 1024 * 1024
    return (cap * 3) // 4


def _choose_tiles(n, kp, np_, vmem_limit):
    """Pick (tm, tn, tk, mp). kp/np_ are already multiples of 128."""
    # tm: balance against the real batch extent to minimize padding waste
    # (only the mandatory sublane-of-8 rounding is paid).
    nm = pl.cdiv(n, _TM_TARGET)
    tm = _round_up(pl.cdiv(n, nm), 8)

    # tn: largest 128-multiple divisor of the padded out_features <= target.
    tn = _divisor_tile(np_, _TN_TARGET, 128)
    nn = np_ // tn

    # If the (M, N) parallel grid collapses to a single block, split M when
    # there is enough work so both TensorCores (v7x) get a block.
    if nm * nn == 1 and n >= 256:
        nm = 2
        tm = _round_up(pl.cdiv(n, nm), 8)
    mp = nm * tm

    # tk: use the full K extent when it comfortably fits in VMEM (no reduction
    # grid axis, no accumulator scratch, no pl.when); otherwise tile K.
    single_k_bytes = 2 * 4 * (tm * kp + kp * tn + tn + tm * tn)  # double-buffered
    if kp <= _TK_SINGLE_MAX and single_k_bytes <= (vmem_limit * 7) // 10:
        tk = kp
    else:
        tk = _divisor_tile(kp, _TK_TARGET, 128)
    return tm, tn, tk, mp


def _linear_kernel_single_k(x_ref, wt_ref, b_ref, o_ref):
    # Whole K in one block: straight dot + bias, no accumulator scratch.
    o_ref[...] = (
        jnp.dot(x_ref[...], wt_ref[...], preferred_element_type=jnp.float32)
        + b_ref[...].astype(jnp.float32)
    ).astype(o_ref.dtype)


def _linear_kernel_reduce(x_ref, wt_ref, b_ref, o_ref, acc_ref):
    # K-tiled path: output-resident f32 accumulator with init/finalize.
    k = pl.program_id(2)

    @pl.when(k == 0)
    def _():
        acc_ref[...] = jnp.zeros_like(acc_ref)

    acc_ref[...] += jnp.dot(
        x_ref[...], wt_ref[...], preferred_element_type=jnp.float32
    )

    @pl.when(k == pl.num_programs(2) - 1)
    def _():
        # Bias added exactly once, at the finalize step; single cast at store.
        o_ref[...] = (acc_ref[...] + b_ref[...].astype(jnp.float32)).astype(o_ref.dtype)


@functools.partial(
    jax.jit, static_argnames=("out_f", "tm", "tn", "tk", "mp", "vmem_limit")
)
def _linear_pallas(x, wt_p, b_p, *, out_f, tm, tn, tk, mp, vmem_limit):
    n, in_f = x.shape
    kp, np_ = wt_p.shape

    # Zero-pad x to tile multiples (zero K padding contributes nothing to the
    # dot; padded M rows are sliced away below). W/bias are pre-padded.
    x_p = jnp.pad(x, ((0, mp - n), (0, kp - in_f)))

    nm, nn, nk = mp // tm, np_ // tn, kp // tk

    cost = pl.CostEstimate(
        flops=2 * mp * kp * np_,
        transcendentals=0,
        # Account for the re-reads implied by the grid: x per N block, W per M block.
        bytes_accessed=4 * (mp * kp * nn + kp * np_ * nm + mp * np_),
    )

    if nk == 1:
        grid = (nm, nn)
        kernel = _linear_kernel_single_k
        in_specs = [
            pl.BlockSpec((tm, tk), lambda i, j: (i, 0)),
            pl.BlockSpec((tk, tn), lambda i, j: (0, j)),
            pl.BlockSpec((1, tn), lambda i, j: (0, j)),
        ]
        out_specs = pl.BlockSpec((tm, tn), lambda i, j: (i, j))
        scratch_shapes = []
        dim_sem = ("parallel", "parallel")
    else:
        grid = (nm, nn, nk)
        kernel = _linear_kernel_reduce
        in_specs = [
            pl.BlockSpec((tm, tk), lambda i, j, k: (i, k)),
            pl.BlockSpec((tk, tn), lambda i, j, k: (k, j)),
            pl.BlockSpec((1, tn), lambda i, j, k: (0, j)),
        ]
        out_specs = pl.BlockSpec((tm, tn), lambda i, j, k: (i, j))
        scratch_shapes = [pltpu.VMEM((tm, tn), jnp.float32)]
        dim_sem = ("parallel", "parallel", "arbitrary")

    out_p = pl.pallas_call(
        kernel,
        out_shape=jax.ShapeDtypeStruct((mp, np_), x.dtype),
        grid_spec=pltpu.PrefetchScalarGridSpec(
            num_scalar_prefetch=0,
            grid=grid,
            in_specs=in_specs,
            out_specs=out_specs,
            scratch_shapes=scratch_shapes,
        ),
        compiler_params=pltpu.CompilerParams(
            dimension_semantics=dim_sem,
            vmem_limit_bytes=vmem_limit,
        ),
        cost_estimate=cost,
    )(x_p, wt_p, b_p)

    return out_p[:n, :out_f]


def linear_forward(x, wt_padded, bias_padded, out_f):
    """y = x @ W^T + b, with W already transposed+padded by the caller (cached)."""
    n = x.shape[0]
    kp, np_ = wt_padded.shape
    vmem_limit = _vmem_limit_bytes()
    tm, tn, tk, mp = _choose_tiles(n, kp, np_, vmem_limit)
    return _linear_pallas(
        x, wt_padded, bias_padded,
        out_f=out_f, tm=tm, tn=tn, tk=tk, mp=mp, vmem_limit=vmem_limit,
    )


class LinearRegression:
    """JAX/Pallas mirror of the PyTorch LinearRegression module (nn.Linear forward)."""

    def __init__(self, input_feature, output_feature, key):
        # PyTorch nn.Linear default init: U(-1/sqrt(in_f), 1/sqrt(in_f))
        kw, kb = jax.random.split(key)
        bound = 1.0 / float(input_feature) ** 0.5
        self.weight = jax.random.uniform(
            kw, (output_feature, input_feature), jnp.float32, -bound, bound
        )
        self.bias = jax.random.uniform(
            kb, (output_feature,), jnp.float32, -bound, bound
        )
        self.out_features = output_feature
        # Weight prep hoisted out of the per-call path: transpose + pad ONCE.
        kp = _round_up(input_feature, 128)
        np_ = _round_up(output_feature, 128)
        self._wt_padded = jnp.pad(
            self.weight.T, ((0, kp - input_feature), (0, np_ - output_feature))
        )
        self._bias_padded = jnp.pad(
            self.bias.reshape(1, output_feature), ((0, 0), (0, np_ - output_feature))
        )

    def __call__(self, x):
        # NOTE: for genuinely tiny shapes a production dispatcher would fall
        # back to plain XLA; the kernel path is used here to exercise Pallas.
        return linear_forward(x, self._wt_padded, self._bias_padded, self.out_features)


if __name__ == "__main__":
    key = jax.random.PRNGKey(0)

    # --- Original demo from the PyTorch script: X = [[1],[2],[3],[4]] ---
    X = jnp.array([[1.0], [2.0], [3.0], [4.0]], dtype=jnp.float32)
    model = LinearRegression(1, 1, key)
    out = jax.block_until_ready(model(X))
    ref = X @ model.weight.T + model.bias
    assert out.shape == (4, 1)
    assert jnp.allclose(out, ref, atol=1e-5), (out, ref)

    # --- Ragged batch: exercises balanced-M tiling + the 2-parallel-block split ---
    k1, k2 = jax.random.split(jax.random.PRNGKey(0))
    model2 = LinearRegression(96, 160, k1)           # in_f=96, out_f=160
    X2 = jax.random.normal(k2, (300, 96), jnp.float32)
    out2 = jax.block_until_ready(model2(X2))
    ref2 = X2 @ model2.weight.T + model2.bias
    assert out2.shape == (300, 160)
    assert jnp.allclose(out2, ref2, atol=1e-4, rtol=1e-4)

    # --- Larger K: exercises the K-tiled accumulator (pl.when init/finalize) path ---
    k3, k4 = jax.random.split(jax.random.PRNGKey(1))
    model3 = LinearRegression(2304, 256, k3)         # in_f=2304 -> K grid > 1
    X3 = jax.random.normal(k4, (200, 2304), jnp.float32)
    out3 = jax.block_until_ready(model3(X3))
    ref3 = X3 @ model3.weight.T + model3.bias
    assert out3.shape == (200, 256)
    assert jnp.allclose(out3, ref3, atol=1e-3, rtol=1e-4)

    print("KERNEL_OK")
</pallas_src>

<mosaic_0001>
module attributes {stable_mosaic.version = 11 : i64} {
  func.func @_linear_kernel_single_k(%arg0: i32, %arg1: i32, %arg2: memref<8x128xf32, #tpu.memory_space<vmem>>, %arg3: memref<128x128xf32, #tpu.memory_space<vmem>>, %arg4: memref<1x128xf32, #tpu.memory_space<vmem>>, %arg5: memref<8x128xf32, #tpu.memory_space<vmem>>) attributes {dimension_semantics = [#tpu.dimension_semantics<parallel>, #tpu.dimension_semantics<parallel>], iteration_bounds = array<i64: 1, 1>, scalar_prefetch = 0 : i64, scratch_operands = 0 : i64, tpu.core_type = #tpu.core_type<tc>, window_params = [{transform_indices = @transform_0, window_bounds = array<i64: 8, 128>}, {transform_indices = @transform_1, window_bounds = array<i64: 128, 128>}, {transform_indices = @transform_2, window_bounds = array<i64: 1, 128>}, {transform_indices = @transform_3, window_bounds = array<i64: 8, 128>}]} {
    %c0 = arith.constant 0 : index
    %c0_0 = arith.constant 0 : index
    %0 = vector.load %arg2[%c0, %c0_0] : memref<8x128xf32, #tpu.memory_space<vmem>>, vector<8x128xf32>
    %c0_1 = arith.constant 0 : index
    %c0_2 = arith.constant 0 : index
    %1 = vector.load %arg3[%c0_1, %c0_2] : memref<128x128xf32, #tpu.memory_space<vmem>>, vector<128x128xf32>
    %cst = arith.constant dense<0.000000e+00> : vector<8x128xf32>
    %2 = tpu.matmul %0, %1, %cst {dimension_numbers = #tpu.dot_dimension_numbers<[1], [0], [0], [1], [0, 0, 1, 1], [], []>} : vector<8x128xf32>, vector<128x128xf32>, vector<8x128xf32> -> vector<8x128xf32>
    %c0_3 = arith.constant 0 : index
    %c0_4 = arith.constant 0 : index
    %3 = vector.load %arg4[%c0_3, %c0_4] : memref<1x128xf32, #tpu.memory_space<vmem>>, vector<1x128xf32>
    %4 = vector.broadcast %3 : vector<1x128xf32> to vector<8x128xf32>
    %5 = arith.addf %2, %4 : vector<8x128xf32>
    %c0_5 = arith.constant 0 : index
    %c0_6 = arith.constant 0 : index
    %6 = vector.load %arg5[%c0_5, %c0_6] : memref<8x128xf32, #tpu.memory_space<vmem>>, vector<8x128xf32>
    tpu.vector_store %arg5[%c0_5, %c0_6], %5 {strides = array<i32>} : memref<8x128xf32, #tpu.memory_space<vmem>>, vector<8x128xf32>,
    return
  }
  func.func @transform_0(%arg0: i32, %arg1: i32) -> (i32, i32) {
    %c0_i32 = arith.constant 0 : i32
    %c0_i32_0 = arith.constant 0 : i32
    return %arg0, %c0_i32 : i32, i32
  }
  func.func @transform_1(%arg0: i32, %arg1: i32) -> (i32, i32) {
    %c0_i32 = arith.constant 0 : i32
    %c0_i32_0 = arith.constant 0 : i32
    return %c0_i32, %arg1 : i32, i32
  }
  func.func @transform_2(%arg0: i32, %arg1: i32) -> (i32, i32) {
    %c0_i32 = arith.constant 0 : i32
    %c0_i32_0 = arith.constant 0 : i32
    return %c0_i32, %arg1 : i32, i32
  }
  func.func @transform_3(%arg0: i32, %arg1: i32) -> (i32, i32) {
    %c0_i32 = arith.constant 0 : i32
    return %arg0, %arg1 : i32, i32
  }
}

</mosaic_0001>

<bundles_post_ra>
// kernel: _linear_pallas.1
= control target key start
LH: loop header
LB: loop body
LE: loop exit
PB: predicated region body
PF: predicated region fallthrough
CT: control target
= control target key end

     0   :  { %8 = vsyncpa [#allocation3], 0  ;;  %s208_s12 = smov [#allocation2]   ;;  %s245_s0 = inlined_call_operand.vmem [shape: f32[8,128], index: 0, kind: input, shape index: {}]   ;;  %s246_s1 = inlined_call_operand.hbm [shape: f32[128,128], index: 1, kind: input, shape index: {}]   ;;  %s247_s2 = inlined_call_operand.vmem [shape: f32[1,128], index: 2, kind: input, shape index: {}]   ;;  %s248_s3 = inlined_call_operand.vmem [shape: f32[8,128], index: 3, kind: output, shape index: {}]  }
   0x1   :  { %s16_s13 = sshll.u32 %s208_s12, 4  ;;  %s17_s13 = int_to_ptr.vmem [resolvable:$true] %s16_s13 }
   0x2   :  { %s194_s14 = scalar_lea.vmem %s17_s13, 2048  ;;  %p199_p1 = scmp.lt.s32.totalorder %s17_s13, %s17_s13 }
   0x3   :  { %p195_p0 = scmp.ne.s32.totalorder %s17_s13, %s194_s14  ;;  %p200_p2 = scmp.lt.s32.totalorder %s194_s14, %s194_s14 }
   0x5   :  { %p201_p3 = por %p200_p2, %p199_p1 }
   0x7   :  { %p202_p4 = pnand %p201_p3, %p195_p0 }
   0x9   :  { %205 = shalt.err (!%p202_p4)
}
   0xa   :  { %s209_s15 = smov 128   ;;  %s210_s16 = smov 8  }
   0xb   :  { %22 = dma.hbm_to_vmem [thread:$0]  %s246_s1, 2048, %s17_s13, [#allocation3], %s209_s15, %s209_s15, %s210_s16  }
   0xc   :  { %206 = dma.done.wait [#allocation3], 2048  }
   0xd   :  { %207 = vsyncadd [#allocation3], 4294965248  ;;  %v211_v0 = vmov 0.0   ;;  %vm212_vm0 = vmmov 0   ;;  %v44_v1 = vld [vmem:[#allocation2 + $0x78] sm:$0xff]  ;;  %v43_v2 = vld [vmem:[#allocation2 + $0x70] sm:$0xff] }
   0xe   :  { %146 = vmatprep.subr.mxu0 %v211_v0  ;;  %178 = vmatprep.mubr.msk.f32.mxu0 %vm212_vm0, %v211_v0  ;;  %v42_v3 = vld [vmem:[#allocation2 + $0x68] sm:$0xff]  ;;  %v41_v4 = vld [vmem:[#allocation2 + $0x60] sm:$0xff]  ;;  %v40_v5 = vld [vmem:[#allocation2 + $0x58] sm:$0xff] }
   0xf   :  { %147 = vmatpush3.msra.mxu0 %v44_v1  ;;  %v39_v6 = vld [vmem:[#allocation2 + $0x50] sm:$0xff]  ;;  %v38_v7 = vld [vmem:[#allocation2 + $0x48] sm:$0xff]  ;;  %v37_v8 = vld [vmem:[#allocation2 + $0x40] sm:$0xff] }
  0x10   :  { %148 = vmatprep.subr.mxu0 %v211_v0  ;;  %v36_v9 = vld [vmem:[#allocation2 + $0x38] sm:$0xff]  ;;  %v35_v10 = vld [vmem:[#allocation2 + $0x30] sm:$0xff]  ;;  %v34_v11 = vld [vmem:[#allocation2 + $0x28] sm:$0xff] }
  0x11   :  { %149 = vmatpush3.msra.mxu0 %v43_v2  ;;  %v33_v12 = vld [vmem:[#allocation2 + $0x20] sm:$0xff]  ;;  %v32_v13 = vld [vmem:[#allocation2 + $0x18] sm:$0xff]  ;;  %v31_v14 = vld [vmem:[#allocation2 + $0x10] sm:$0xff] }
  0x12   :  { %150 = vmatprep.subr.mxu0 %v211_v0  ;;  %v30_v15 = vld [vmem:[#allocation2 + $0x8] sm:$0xff]  ;;  %v29_v16 = vld [vmem:[#allocation2] sm:$0xff] }
  0x13   :  { %151 = vmatpush3.msra.mxu0 %v42_v3  ;;  %v28_v17 = vld [vmem:[%s245_s0] sm:$0xff] }
  0x14   :  { %152 = vmatprep.subr.mxu0 %v211_v0  ;;  %v128_v18 = vld [vmem:[%s247_s2] ss:$0 sm:$0xff] }
  0x15   :  { %153 = vmatpush3.msra.mxu0 %v41_v4 }
  0x16   :  { %154 = vmatprep.subr.mxu0 %v211_v0 }
  0x17   :  { %155 = vmatpush3.msra.mxu0 %v40_v5 }
  0x18   :  { %156 = vmatprep.subr.mxu0 %v211_v0 }
  0x19   :  { %157 = vmatpush3.msra.mxu0 %v39_v6 }
  0x1a   :  { %158 = vmatprep.subr.mxu0 %v211_v0 }
  0x1b   :  { %159 = vmatpush3.msra.mxu0 %v38_v7 }
  0x1c   :  { %160 = vmatprep.subr.mxu0 %v211_v0 }
  0x1d   :  { %161 = vmatpush3.msra.mxu0 %v37_v8 }
  0x1e   :  { %162 = vmatprep.subr.mxu0 %v211_v0 }
  0x1f   :  { %163 = vmatpush3.msra.mxu0 %v36_v9 }
  0x20   :  { %164 = vmatprep.subr.mxu0 %v211_v0 }
  0x21   :  { %165 = vmatpush3.msra.mxu0 %v35_v10 }
  0x22   :  { %166 = vmatprep.subr.mxu0 %v211_v0 }
  0x23   :  { %167 = vmatpush3.msra.mxu0 %v34_v11 }
  0x24   :  { %168 = vmatprep.subr.mxu0 %v211_v0 }
  0x25   :  { %169 = vmatpush3.msra.mxu0 %v33_v12 }
  0x26   :  { %170 = vmatprep.subr.mxu0 %v211_v0 }
  0x27   :  { %171 = vmatpush3.msra.mxu0 %v32_v13 }
  0x28   :  { %172 = vmatprep.subr.mxu0 %v211_v0 }
  0x29   :  { %173 = vmatpush3.msra.mxu0 %v31_v14 }
  0x2a   :  { %174 = vmatprep.subr.mxu0 %v211_v0 }
  0x2b   :  { %175 = vmatpush3.msra.mxu0 %v30_v15 }
  0x2c   :  { %176 = vmatprep.subr.mxu0 %v211_v0 }
  0x2d   :  { %177 = vmatpush3.msra.mxu0 %v29_v16 }
  0x2e   :  { %179 = vmatmul.mubr.f32.vlgmr.msra.gmra.mxu0 %v28_v17 }
  0xee   :  { %v118_v19 = vpop.f32.mrf.mxu0 }
  0xef   :  { %v119_v20 = vadd.f32 %v128_v18, %v118_v19 }
  0xf0   :  { %v180_v21 = vpop.f32.mrf.mxu0 }
  0xf1   :  { %122 = vst [vmem:[%s248_s3] sm:$0xff] %v119_v20 }
  0xf2   :  { %127 = vsyncpa [#allocation3], 1 }

</bundles_post_ra>
